<compile_context>
chip_gen: v5e
topology: v5e:2x2
jax: 0.10.0
libtpu: 0.0.40
codegen_flags: <defaults>
</compile_context>

<pallas_src>
import functools

import jax
import jax.numpy as jnp
from jax.experimental import pallas as pl
from jax.experimental.pallas import tpu as pltpu

_NEG = -1e30  # "minus infinity" for padded softmax / log-softmax lanes (finite -> no NaNs)
_ALIGN = 16   # bf16 native sublane tile (16 rows) -> all slab blocks tile-aligned


def _round_up(n, m):
    return (n + m - 1) // m * m


def _layout(P, E, H, L):
    """Row offsets of each weight block inside the packed bf16 slab."""
    LANE = _round_up(max(128, E, L, P, 2 * H, 4 * H), 128)
    blocks = (("attn_e", E), ("attn_h", H), ("comb_e", E), ("comb_a", 2 * H),
              ("g0_x", H), ("g0_h", H), ("g1_x", H), ("g1_h", H), ("pho", H))
    off = {}
    r = 0
    for name, rows in blocks:
        off[name] = r
        r += _round_up(rows, _ALIGN)
    return LANE, off, r


# ---------------------------------------------------------------------------
# Raw (PyTorch-layout) parameters + one-time packing.
# ---------------------------------------------------------------------------
def make_raw_params(key, total_phonemes, phoneme_embedding, hidden, max_len):
    """Deterministic synthetic init mirroring the PyTorch module's shapes."""
    P, E, H, L = total_phonemes, phoneme_embedding, hidden, max_len
    keys = jax.random.split(key, 16)
    u = lambda k, shape, scale: jax.random.uniform(k, shape, jnp.float32, -scale, scale)

    params = {
        "embedding": u(keys[0], (P, E), 1.0),                       # nn.Embedding(P, E)
        "attn_w": u(keys[1], (L, H + E), (H + E) ** -0.5),          # nn.Linear(H+E, L)
        "attn_b": u(keys[2], (L,), (H + E) ** -0.5),
        "comb_w": u(keys[3], (H, 2 * H + E), (2 * H + E) ** -0.5),  # Linear(2H+E, H)
        "comb_b": u(keys[4], (H,), (2 * H + E) ** -0.5),
        "pho_w": u(keys[5], (P, H), H ** -0.5),                     # nn.Linear(H, P)
        "pho_b": u(keys[6], (P,), H ** -0.5),
    }
    # GRU(H, H, num_layers=2): weight_ih/hh (3H, H), biases (3H,), gate order r|z|n.
    for layer, base in ((0, 7), (1, 11)):
        params[f"gru_wih{layer}"] = u(keys[base + 0], (3 * H, H), H ** -0.5)
        params[f"gru_whh{layer}"] = u(keys[base + 1], (3 * H, H), H ** -0.5)
        params[f"gru_bih{layer}"] = u(keys[base + 2], (3 * H,), H ** -0.5)
        params[f"gru_bhh{layer}"] = u(keys[base + 3], (3 * H,), H ** -0.5)
    return params


def pack_params(raw, total_phonemes, phoneme_embedding, hidden, max_len):
    """One-time packing (init, not per step):
       * wslab  : bf16 (rows, LANE) -- all pre-transposed weight blocks (x/h split)
       * biases : f32  (5, LANE)    -- bias rows, -1e30 softmax pads kept in f32
       * emb    : f32  (P, 1, LANE) -- embedding table for dynamic row lookup
    """
    P, E, H, L = total_phonemes, phoneme_embedding, hidden, max_len
    LANE, off, n_rows = _layout(P, E, H, L)
    f32 = jnp.float32

    wslab = jnp.zeros((n_rows, LANE), f32)

    def put(name, m):
        nonlocal wslab
        m = jnp.asarray(m, f32)
        wslab = wslab.at[off[name]:off[name] + m.shape[0], :m.shape[1]].set(m)

    attn_wT = jnp.asarray(raw["attn_w"], f32).T          # (E+H, L)
    put("attn_e", attn_wT[:E])
    put("attn_h", attn_wT[E:])
    comb_wT = jnp.asarray(raw["comb_w"], f32).T          # (E+2H, H)
    put("comb_e", comb_wT[:E])
    put("comb_a", comb_wT[E:])
    for layer in (0, 1):
        wih_t = jnp.asarray(raw[f"gru_wih{layer}"], f32).T   # (H, 3H) cols r|z|n
        whh_t = jnp.asarray(raw[f"gru_whh{layer}"], f32).T
        zeros = jnp.zeros((H, H), f32)
        put(f"g{layer}_x", jnp.concatenate([wih_t, zeros], axis=1))                       # [ir|iz|in|0]
        put(f"g{layer}_h", jnp.concatenate([whh_t[:, :2 * H], zeros, whh_t[:, 2 * H:]], 1))  # [hr|hz|0|hn]
    put("pho", jnp.asarray(raw["pho_w"], f32).T)         # (H, P)

    def bias_row(vec, fill):
        vec = jnp.asarray(vec, f32)
        return jnp.full((LANE,), fill, f32).at[:vec.shape[0]].set(vec)

    def gru_bias(layer):
        bih = jnp.asarray(raw[f"gru_bih{layer}"], f32)
        bhh = jnp.asarray(raw[f"gru_bhh{layer}"], f32)
        # r/z gates pre-summed; n gate keeps gi_n / gh_n biases separate.
        return bias_row(jnp.concatenate(
            [bih[:2 * H] + bhh[:2 * H], bih[2 * H:], bhh[2 * H:]]), 0.0)

    biases = jnp.stack([
        bias_row(raw["attn_b"], _NEG),   # padded attn lanes -> prob 0
        bias_row(raw["comb_b"], 0.0),
        gru_bias(0),
        gru_bias(1),
        bias_row(raw["pho_b"], _NEG),    # padded logit lanes -> ignored by lse
    ], axis=0)

    emb = jnp.zeros((P, 1, LANE), f32).at[:, 0, :E].set(jnp.asarray(raw["embedding"], f32))

    return {"wslab": wslab.astype(jnp.bfloat16), "biases": biases, "emb": emb}


# ---------------------------------------------------------------------------
# Pallas kernel: fused T-step decode (batch = 1), one grid step = one decoder step.
# ---------------------------------------------------------------------------
def _make_decoder_kernel(P, E, H, L, LANE, off):
    f32, bf16 = jnp.float32, jnp.bfloat16
    r_ae, r_ah = off["attn_e"], off["attn_h"]
    r_ce, r_ca = off["comb_e"], off["comb_a"]
    r_g0x, r_g0h = off["g0_x"], off["g0_h"]
    r_g1x, r_g1h = off["g1_x"], off["g1_h"]
    r_pho = off["pho"]

    def kernel(tok_ref, emb_ref, hinit_ref, enc_ref, w_ref, b_ref, out_ref, h_scr):
        t = pl.program_id(0)

        @pl.when(t == 0)
        def _():
            h_scr[...] = hinit_ref[...]

        tok = tok_ref[t]                                       # SMEM scalar (prefetched)

        # --- embedding: dynamic leading-axis row read (no MXU push, no gather) ----
        emb = emb_ref[tok][:, :E].astype(bf16)                 # (1, E) bf16
        # TODO(synk): nn.Dropout(p=0.2) skipped (inference semantics).

        h0 = h_scr[0:1, :]                                     # (1, H) f32
        h1 = h_scr[1:2, :]

        # --- attention: softmax(W_e @ emb + W_h @ h0 + b) — two accumulating pushes
        s = (jnp.dot(emb, w_ref[r_ae:r_ae + E, :], preferred_element_type=f32)
             + jnp.dot(h0.astype(bf16), w_ref[r_ah:r_ah + H, :], preferred_element_type=f32)
             + b_ref[0:1, :])                                  # (1, LANE); pad lanes = -1e30
        s = s - jnp.max(s, axis=1, keepdims=True)
        es = jnp.exp(s)
        attn_w = es / jnp.sum(es, axis=1, keepdims=True)       # exact divide (PyTorch parity)

        # --- attn_applied = attn_w @ encoder_outputs -------------------------------
        applied = jnp.dot(attn_w[:, :L], enc_ref[...], preferred_element_type=f32)  # (1, 2H)

        # --- attn_combine + relu — two accumulating pushes, no lane-concat ---------
        c = (jnp.dot(emb, w_ref[r_ce:r_ce + E, :], preferred_element_type=f32)
             + jnp.dot(applied.astype(bf16), w_ref[r_ca:r_ca + 2 * H, :],
                       preferred_element_type=f32)
             + b_ref[1:2, :])                                  # (1, LANE)
        x = jnp.maximum(c[:, :H], 0.0)                         # (1, H)

        # --- 2-layer GRU: x/h split pushes, fused r|z sigmoid ----------------------
        def gru_cell(xin, hprev, rx, rh, brow):
            g = (jnp.dot(xin.astype(bf16), w_ref[rx:rx + H, :], preferred_element_type=f32)
                 + jnp.dot(hprev.astype(bf16), w_ref[rh:rh + H, :], preferred_element_type=f32)
                 + b_ref[brow:brow + 1, :])                    # (1, LANE): [r | z | gi_n | gh_n]
            rz = jax.nn.sigmoid(g[:, :2 * H])                  # one EUP launch for both gates
            r, z = rz[:, :H], rz[:, H:2 * H]
            n = jnp.tanh(g[:, 2 * H:3 * H] + r * g[:, 3 * H:4 * H])
            return (1.0 - z) * n + z * hprev

        h0n = gru_cell(x, h0, r_g0x, r_g0h, 2)
        h1n = gru_cell(h0n, h1, r_g1x, r_g1h, 3)

        # --- output projection + log_softmax ---------------------------------------
        logits = (jnp.dot(h1n.astype(bf16), w_ref[r_pho:r_pho + H, :],
                          preferred_element_type=f32)
                  + b_ref[4:5, :])                             # (1, LANE); pad lanes = -1e30
        m = jnp.max(logits, axis=1, keepdims=True)
        sh = logits - m
        lse = jnp.log(jnp.sum(jnp.exp(sh), axis=1, keepdims=True))
        logp = sh - lse

        # --- carry hidden state; single lane-dense (4, LANE) store -----------------
        newh = jnp.concatenate([h0n, h1n], axis=0)             # (2, H)
        h_scr[...] = newh
        if LANE > H:
            newh_pad = jnp.concatenate([newh, jnp.zeros((2, LANE - H), f32)], axis=1)
        else:
            newh_pad = newh
        out_ref[...] = jnp.concatenate([logp, attn_w, newh_pad], axis=0)   # (4, LANE)

    return kernel


# ---------------------------------------------------------------------------
# Wrappers.
# ---------------------------------------------------------------------------
@functools.partial(jax.jit, static_argnames=("total_phonemes", "phoneme_embedding",
                                             "hidden", "max_len"))
def decoder_rnn_decode(packed, tokens, hidden_state, encoder_outputs, *,
                       total_phonemes, phoneme_embedding, hidden, max_len):
    """Fused T-step (teacher-forced) decode = T applications of decoderRNN.forward.

    tokens:           (T,)  int32 input token per step
    hidden_state:     (2, 1, H) float32 initial GRU state
    encoder_outputs:  (L, 2H)   float32
    returns (log_probs (T, P), final hidden (2, 1, H), attn_weights (T, L))
    """
    P, E, H, L = total_phonemes, phoneme_embedding, hidden, max_len
    LANE, off, _ = _layout(P, E, H, L)
    kernel = _make_decoder_kernel(P, E, H, L, LANE, off)

    tokens = jnp.asarray(tokens, jnp.int32).reshape(-1)
    T = tokens.shape[0]
    h2d = hidden_state.reshape(2, H).astype(jnp.float32)
    enc = encoder_outputs.astype(jnp.float32)
    wslab, biases, emb = packed["wslab"], packed["biases"], packed["emb"]

    grid_spec = pltpu.PrefetchScalarGridSpec(
        num_scalar_prefetch=1,                      # tokens -> SMEM before the grid runs
        grid=(T,),
        in_specs=[
            # All inputs keep a constant block index -> resident in VMEM, fetched once.
            pl.BlockSpec(emb.shape, lambda t, toks: (0, 0, 0)),     # embedding table
            pl.BlockSpec((2, H), lambda t, toks: (0, 0)),           # initial hidden
            pl.BlockSpec(enc.shape, lambda t, toks: (0, 0)),        # encoder outputs
            pl.BlockSpec(wslab.shape, lambda t, toks: (0, 0)),      # bf16 weight slab
            pl.BlockSpec(biases.shape, lambda t, toks: (0, 0)),     # f32 biases / pads
        ],
        out_specs=pl.BlockSpec((None, 4, LANE), lambda t, toks: (t, 0, 0)),
        scratch_shapes=[pltpu.VMEM((2, H), jnp.float32)],           # carried GRU state
    )
    out = pl.pallas_call(
        kernel,
        grid_spec=grid_spec,
        out_shape=jax.ShapeDtypeStruct((T, 4, LANE), jnp.float32),
        compiler_params=pltpu.CompilerParams(dimension_semantics=("arbitrary",)),
    )(tokens, emb, h2d, enc, wslab, biases)

    logp = out[:, 0, :P]                       # (T, P)
    attn_w = out[:, 1, :L]                     # (T, L)
    new_hidden = out[T - 1, 2:4, :H].reshape(2, 1, H)
    return logp, new_hidden, attn_w


def decoder_rnn_step(packed, ipt, hidden_state, encoder_outputs, *,
                     total_phonemes, phoneme_embedding, hidden, max_len):
    """decoderRNN.forward (single step, eval mode) == fused decode with T = 1."""
    tokens = jnp.asarray(ipt, jnp.int32).reshape(1)
    logp, new_hidden, attn_w = decoder_rnn_decode(
        packed, tokens, hidden_state, encoder_outputs,
        total_phonemes=total_phonemes, phoneme_embedding=phoneme_embedding,
        hidden=hidden, max_len=max_len)
    return logp[0:1], new_hidden, attn_w[0:1]


# ---------------------------------------------------------------------------
# Pure-JAX reference (raw PyTorch-layout params).
# ---------------------------------------------------------------------------
def decoder_rnn_ref(params, ipt, hidden_state, encoder_outputs, E, H):
    emb = params["embedding"][ipt].reshape(1, E)
    h = hidden_state.reshape(2, H)
    s = jnp.concatenate([emb, h[0:1]], axis=1) @ params["attn_w"].T + params["attn_b"]
    attn_w = jax.nn.softmax(s, axis=1)
    applied = attn_w @ encoder_outputs
    x = jax.nn.relu(
        jnp.concatenate([emb, applied], axis=1) @ params["comb_w"].T + params["comb_b"])

    def cell(xin, hh, wih, whh, bih, bhh):
        gi = xin @ wih.T + bih
        gh = hh @ whh.T + bhh
        r = jax.nn.sigmoid(gi[:, :H] + gh[:, :H])
        z = jax.nn.sigmoid(gi[:, H:2 * H] + gh[:, H:2 * H])
        n = jnp.tanh(gi[:, 2 * H:] + r * gh[:, 2 * H:])
        return (1 - z) * n + z * hh

    h0n = cell(x, h[0:1], params["gru_wih0"], params["gru_whh0"],
               params["gru_bih0"], params["gru_bhh0"])
    h1n = cell(h0n, h[1:2], params["gru_wih1"], params["gru_whh1"],
               params["gru_bih1"], params["gru_bhh1"])
    logits = h1n @ params["pho_w"].T + params["pho_b"]
    logp = jax.nn.log_softmax(logits, axis=1)
    return logp, jnp.stack([h0n, h1n], axis=0), attn_w


def decode_ref(params, tokens, hidden0, encoder_outputs, E, H):
    h = hidden0
    logps, attns = [], []
    for tok in tokens:
        lp, h, aw = decoder_rnn_ref(params, tok, h, encoder_outputs, E, H)
        logps.append(lp)
        attns.append(aw)
    return jnp.concatenate(logps, axis=0), h.reshape(2, 1, H), jnp.concatenate(attns, axis=0)


if __name__ == "__main__":
    TOTAL_PHONEMES = 40   # P
    PHONEME_EMB = 32      # E
    HIDDEN = 32           # H
    MAX_LEN = 16          # L; encoder_outputs feature dim = 2H

    key = jax.random.PRNGKey(0)
    pkey, hkey, ekey, tkey = jax.random.split(key, 4)
    raw = make_raw_params(pkey, TOTAL_PHONEMES, PHONEME_EMB, HIDDEN, MAX_LEN)
    packed = pack_params(raw, TOTAL_PHONEMES, PHONEME_EMB, HIDDEN, MAX_LEN)  # once, at init

    hidden0 = 0.1 * jax.random.normal(hkey, (2, 1, HIDDEN), jnp.float32)
    encoder_outputs = jax.random.normal(ekey, (MAX_LEN, 2 * HIDDEN), jnp.float32)

    # ---- module forward (single step) -------------------------------------------
    ipt = jnp.int32(3)
    logp, new_hidden, attn_w = decoder_rnn_step(
        packed, ipt, hidden0, encoder_outputs,
        total_phonemes=TOTAL_PHONEMES, phoneme_embedding=PHONEME_EMB,
        hidden=HIDDEN, max_len=MAX_LEN)
    jax.block_until_ready((logp, new_hidden, attn_w))

    r_logp, r_h, r_aw = decoder_rnn_ref(raw, ipt, hidden0, encoder_outputs,
                                        PHONEME_EMB, HIDDEN)
    assert logp.shape == (1, TOTAL_PHONEMES)
    assert new_hidden.shape == (2, 1, HIDDEN)
    assert attn_w.shape == (1, MAX_LEN)
    assert jnp.allclose(logp, r_logp, atol=2e-2, rtol=2e-2)
    assert jnp.allclose(new_hidden, r_h.reshape(2, 1, HIDDEN), atol=2e-2, rtol=2e-2)
    assert jnp.allclose(attn_w, r_aw, atol=2e-2, rtol=2e-2)

    # ---- fused multi-step decode (teacher forced, weights resident in VMEM) ------
    tokens = jax.random.randint(tkey, (4,), 0, TOTAL_PHONEMES, jnp.int32)
    lp_seq, h_final, aw_seq = decoder_rnn_decode(
        packed, tokens, hidden0, encoder_outputs,
        total_phonemes=TOTAL_PHONEMES, phoneme_embedding=PHONEME_EMB,
        hidden=HIDDEN, max_len=MAX_LEN)
    jax.block_until_ready((lp_seq, h_final, aw_seq))

    r_lp_seq, r_h_final, r_aw_seq = decode_ref(raw, tokens, hidden0, encoder_outputs,
                                               PHONEME_EMB, HIDDEN)
    assert lp_seq.shape == (4, TOTAL_PHONEMES)
    assert aw_seq.shape == (4, MAX_LEN)
    assert h_final.shape == (2, 1, HIDDEN)
    assert jnp.allclose(lp_seq, r_lp_seq, atol=2e-2, rtol=2e-2)
    assert jnp.allclose(aw_seq, r_aw_seq, atol=2e-2, rtol=2e-2)
    assert jnp.allclose(h_final, r_h_final, atol=2e-2, rtol=2e-2)

    print("KERNEL_OK")
</pallas_src>

<mosaic_0001>
module attributes {stable_mosaic.version = 11 : i64} {
  func.func @kernel(%arg0: i32, %arg1: memref<1xi32, #tpu.memory_space<smem>>, %arg2: memref<40x1x128xf32, #tpu.memory_space<vmem>>, %arg3: memref<2x32xf32, #tpu.memory_space<vmem>>, %arg4: memref<16x64xf32, #tpu.memory_space<vmem>>, %arg5: memref<320x128xbf16, #tpu.memory_space<vmem>>, %arg6: memref<5x128xf32, #tpu.memory_space<vmem>>, %arg7: memref<1x4x128xf32, #tpu.memory_space<vmem>>, %arg8: memref<2x32xf32, #tpu.memory_space<vmem>>) attributes {dimension_semantics = [#tpu.dimension_semantics<arbitrary>], iteration_bounds = array<i64: 1>, scalar_prefetch = 1 : i64, scratch_operands = 1 : i64, tpu.core_type = #tpu.core_type<tc>, window_params = [{pipeline_mode = #tpu.pipeline_mode<synchronous>, transform_indices = @transform_0, window_bounds = array<i64: 40, 1, 128>}, {pipeline_mode = #tpu.pipeline_mode<synchronous>, transform_indices = @transform_1, window_bounds = array<i64: 2, 32>}, {pipeline_mode = #tpu.pipeline_mode<synchronous>, transform_indices = @transform_2, window_bounds = array<i64: 16, 64>}, {pipeline_mode = #tpu.pipeline_mode<synchronous>, transform_indices = @transform_3, window_bounds = array<i64: 320, 128>}, {pipeline_mode = #tpu.pipeline_mode<synchronous>, transform_indices = @transform_4, window_bounds = array<i64: 5, 128>}, {transform_indices = @transform_5, window_bounds = array<i64: 1, 4, 128>}]} {
    %c0_i32 = arith.constant 0 : i32
    %0 = arith.cmpi eq, %arg0, %c0_i32 : i32
    %1 = arith.extui %0 : i1 to i32
    %c0_i32_0 = arith.constant 0 : i32
    %2 = arith.cmpi ne, %1, %c0_i32_0 : i32
    scf.if %2 {
      %c0_48 = arith.constant 0 : index
      %c0_49 = arith.constant 0 : index
      %120 = vector.load %arg3[%c0_48, %c0_49] : memref<2x32xf32, #tpu.memory_space<vmem>>, vector<2x32xf32>
      %c0_50 = arith.constant 0 : index
      %c0_51 = arith.constant 0 : index
      %121 = vector.load %arg8[%c0_50, %c0_51] : memref<2x32xf32, #tpu.memory_space<vmem>>, vector<2x32xf32>
      tpu.vector_store %arg8[%c0_50, %c0_51], %120 {strides = array<i32>} : memref<2x32xf32, #tpu.memory_space<vmem>>, vector<2x32xf32>,
    } else {
    }
    %3 = arith.index_cast %arg0 : i32 to index
    %4 = memref.load %arg1[%3] : memref<1xi32, #tpu.memory_space<smem>>
    %5 = arith.index_cast %4 : i32 to index
    %c0 = arith.constant 0 : index
    %c0_1 = arith.constant 0 : index
    %6 = vector.load %arg2[%5, %c0, %c0_1] : memref<40x1x128xf32, #tpu.memory_space<vmem>>, vector<1x1x128xf32>
    %7 = vector.shape_cast %6 : vector<1x1x128xf32> to vector<1x128xf32>
    %8 = vector.extract_strided_slice %7 {offsets = [0, 0], sizes = [1, 32], strides = [1, 1]} : vector<1x128xf32> to vector<1x32xf32>
    %9 = arith.truncf %8 : vector<1x32xf32> to vector<1x32xbf16>
    %c0_2 = arith.constant 0 : index
    %c0_3 = arith.constant 0 : index
    %10 = vector.load %arg8[%c0_2, %c0_3] : memref<2x32xf32, #tpu.memory_space<vmem>>, vector<1x32xf32>
    %c1 = arith.constant 1 : index
    %c0_4 = arith.constant 0 : index
    %11 = vector.load %arg8[%c1, %c0_4] : memref<2x32xf32, #tpu.memory_space<vmem>>, vector<1x32xf32>
    %c0_5 = arith.constant 0 : index
    %c0_6 = arith.constant 0 : index
    %12 = vector.load %arg5[%c0_5, %c0_6] : memref<320x128xbf16, #tpu.memory_space<vmem>>, vector<32x128xbf16>
    %cst = arith.constant dense<0.000000e+00> : vector<1x128xf32>
    %13 = tpu.matmul %9, %12, %cst {dimension_numbers = #tpu.dot_dimension_numbers<[1], [0], [0], [1], [0, 0, 1, 1], [], []>} : vector<1x32xbf16>, vector<32x128xbf16>, vector<1x128xf32> -> vector<1x128xf32>
    %14 = arith.truncf %10 : vector<1x32xf32> to vector<1x32xbf16>
    %c32 = arith.constant 32 : index
    %c0_7 = arith.constant 0 : index
    %15 = vector.load %arg5[%c32, %c0_7] : memref<320x128xbf16, #tpu.memory_space<vmem>>, vector<32x128xbf16>
    %cst_8 = arith.constant dense<0.000000e+00> : vector<1x128xf32>
    %16 = tpu.matmul %14, %15, %cst_8 {dimension_numbers = #tpu.dot_dimension_numbers<[1], [0], [0], [1], [0, 0, 1, 1], [], []>} : vector<1x32xbf16>, vector<32x128xbf16>, vector<1x128xf32> -> vector<1x128xf32>
    %17 = arith.addf %13, %16 : vector<1x128xf32>
    %c0_9 = arith.constant 0 : index
    %c0_10 = arith.constant 0 : index
    %18 = vector.load %arg6[%c0_9, %c0_10] : memref<5x128xf32, #tpu.memory_space<vmem>>, vector<1x128xf32>
    %19 = arith.addf %17, %18 : vector<1x128xf32>
    %cst_11 = arith.constant dense<0xFF800000> : vector<1xf32>
    %20 = vector.multi_reduction <maximumf>, %19, %cst_11 [1] : vector<1x128xf32> to vector<1xf32>
    %21 = vector.shape_cast %20 : vector<1xf32> to vector<1x1xf32>
    %22 = vector.broadcast %21 : vector<1x1xf32> to vector<1x128xf32>
    %23 = arith.subf %19, %22 : vector<1x128xf32>
    %24 = math.exp %23 : vector<1x128xf32>
    %cst_12 = arith.constant dense<0.000000e+00> : vector<1xf32>
    %25 = vector.multi_reduction <add>, %24, %cst_12 [1] : vector<1x128xf32> to vector<1xf32>
    %26 = vector.shape_cast %25 : vector<1xf32> to vector<1x1xf32>
    %27 = vector.broadcast %26 : vector<1x1xf32> to vector<1x128xf32>
    %28 = arith.divf %24, %27 : vector<1x128xf32>
    %29 = vector.extract_strided_slice %28 {offsets = [0, 0], sizes = [1, 16], strides = [1, 1]} : vector<1x128xf32> to vector<1x16xf32>
    %c0_13 = arith.constant 0 : index
    %c0_14 = arith.constant 0 : index
    %30 = vector.load %arg4[%c0_13, %c0_14] : memref<16x64xf32, #tpu.memory_space<vmem>>, vector<16x64xf32>
    %cst_15 = arith.constant dense<0.000000e+00> : vector<1x64xf32>
    %31 = tpu.matmul %29, %30, %cst_15 {dimension_numbers = #tpu.dot_dimension_numbers<[1], [0], [0], [1], [0, 0, 1, 1], [], []>} : vector<1x16xf32>, vector<16x64xf32>, vector<1x64xf32> -> vector<1x64xf32>
    %c64 = arith.constant 64 : index
    %c0_16 = arith.constant 0 : index
    %32 = vector.load %arg5[%c64, %c0_16] : memref<320x128xbf16, #tpu.memory_space<vmem>>, vector<32x128xbf16>
    %cst_17 = arith.constant dense<0.000000e+00> : vector<1x128xf32>
    %33 = tpu.matmul %9, %32, %cst_17 {dimension_numbers = #tpu.dot_dimension_numbers<[1], [0], [0], [1], [0, 0, 1, 1], [], []>} : vector<1x32xbf16>, vector<32x128xbf16>, vector<1x128xf32> -> vector<1x128xf32>
    %34 = arith.truncf %31 : vector<1x64xf32> to vector<1x64xbf16>
    %c96 = arith.constant 96 : index
    %c0_18 = arith.constant 0 : index
    %35 = vector.load %arg5[%c96, %c0_18] : memref<320x128xbf16, #tpu.memory_space<vmem>>, vector<64x128xbf16>
    %cst_19 = arith.constant dense<0.000000e+00> : vector<1x128xf32>
    %36 = tpu.matmul %34, %35, %cst_19 {dimension_numbers = #tpu.dot_dimension_numbers<[1], [0], [0], [1], [0, 0, 1, 1], [], []>} : vector<1x64xbf16>, vector<64x128xbf16>, vector<1x128xf32> -> vector<1x128xf32>
    %37 = arith.addf %33, %36 : vector<1x128xf32>
    %c1_20 = arith.constant 1 : index
    %c0_21 = arith.constant 0 : index
    %38 = vector.load %arg6[%c1_20, %c0_21] : memref<5x128xf32, #tpu.memory_space<vmem>>, vector<1x128xf32>
    %39 = arith.addf %37, %38 : vector<1x128xf32>
    %40 = vector.extract_strided_slice %39 {offsets = [0, 0], sizes = [1, 32], strides = [1, 1]} : vector<1x128xf32> to vector<1x32xf32>
    %cst_22 = arith.constant 0.000000e+00 : f32
    %41 = vector.broadcast %cst_22 : f32 to vector<1x32xf32>
    %42 = arith.maximumf %40, %41 : vector<1x32xf32>
    %43 = arith.truncf %42 : vector<1x32xf32> to vector<1x32xbf16>
    %c160 = arith.constant 160 : index
    %c0_23 = arith.constant 0 : index
    %44 = vector.load %arg5[%c160, %c0_23] : memref<320x128xbf16, #tpu.memory_space<vmem>>, vector<32x128xbf16>
    %cst_24 = arith.constant dense<0.000000e+00> : vector<1x128xf32>
    %45 = tpu.matmul %43, %44, %cst_24 {dimension_numbers = #tpu.dot_dimension_numbers<[1], [0], [0], [1], [0, 0, 1, 1], [], []>} : vector<1x32xbf16>, vector<32x128xbf16>, vector<1x128xf32> -> vector<1x128xf32>
    %46 = arith.truncf %10 : vector<1x32xf32> to vector<1x32xbf16>
    %c192 = arith.constant 192 : index
    %c0_25 = arith.constant 0 : index
    %47 = vector.load %arg5[%c192, %c0_25] : memref<320x128xbf16, #tpu.memory_space<vmem>>, vector<32x128xbf16>
    %cst_26 = arith.constant dense<0.000000e+00> : vector<1x128xf32>
    %48 = tpu.matmul %46, %47, %cst_26 {dimension_numbers = #tpu.dot_dimension_numbers<[1], [0], [0], [1], [0, 0, 1, 1], [], []>} : vector<1x32xbf16>, vector<32x128xbf16>, vector<1x128xf32> -> vector<1x128xf32>
    %49 = arith.addf %45, %48 : vector<1x128xf32>
    %c2 = arith.constant 2 : index
    %c0_27 = arith.constant 0 : index
    %50 = vector.load %arg6[%c2, %c0_27] : memref<5x128xf32, #tpu.memory_space<vmem>>, vector<1x128xf32>
    %51 = arith.addf %49, %50 : vector<1x128xf32>
    %52 = vector.extract_strided_slice %51 {offsets = [0, 0], sizes = [1, 64], strides = [1, 1]} : vector<1x128xf32> to vector<1x64xf32>
    %53 = arith.negf %52 : vector<1x64xf32>
    %54 = math.exp %53 : vector<1x64xf32>
    %cst_28 = arith.constant 1.000000e+00 : f32
    %55 = vector.broadcast %cst_28 : f32 to vector<1x64xf32>
    %56 = arith.addf %55, %54 : vector<1x64xf32>
    %57 = arith.divf %55, %56 : vector<1x64xf32>
    %58 = vector.extract_strided_slice %57 {offsets = [0, 0], sizes = [1, 32], strides = [1, 1]} : vector<1x64xf32> to vector<1x32xf32>
    %59 = vector.extract_strided_slice %57 {offsets = [0, 32], sizes = [1, 32], strides = [1, 1]} : vector<1x64xf32> to vector<1x32xf32>
    %60 = vector.extract_strided_slice %51 {offsets = [0, 64], sizes = [1, 32], strides = [1, 1]} : vector<1x128xf32> to vector<1x32xf32>
    %61 = vector.extract_strided_slice %51 {offsets = [0, 96], sizes = [1, 32], strides = [1, 1]} : vector<1x128xf32> to vector<1x32xf32>
    %62 = arith.mulf %58, %61 : vector<1x32xf32>
    %63 = arith.addf %60, %62 : vector<1x32xf32>
    %64 = math.tanh %63 : vector<1x32xf32>
    %cst_29 = arith.constant 1.000000e+00 : f32
    %65 = vector.broadcast %cst_29 : f32 to vector<1x32xf32>
    %66 = arith.subf %65, %59 : vector<1x32xf32>
    %67 = arith.mulf %66, %64 : vector<1x32xf32>
    %68 = arith.mulf %59, %10 : vector<1x32xf32>
    %69 = arith.addf %67, %68 : vector<1x32xf32>
    %70 = arith.truncf %69 : vector<1x32xf32> to vector<1x32xbf16>
    %c224 = arith.constant 224 : index
    %c0_30 = arith.constant 0 : index
    %71 = vector.load %arg5[%c224, %c0_30] : memref<320x128xbf16, #tpu.memory_space<vmem>>, vector<32x128xbf16>
    %cst_31 = arith.constant dense<0.000000e+00> : vector<1x128xf32>
    %72 = tpu.matmul %70, %71, %cst_31 {dimension_numbers = #tpu.dot_dimension_numbers<[1], [0], [0], [1], [0, 0, 1, 1], [], []>} : vector<1x32xbf16>, vector<32x128xbf16>, vector<1x128xf32> -> vector<1x128xf32>
    %73 = arith.truncf %11 : vector<1x32xf32> to vector<1x32xbf16>
    %c256 = arith.constant 256 : index
    %c0_32 = arith.constant 0 : index
    %74 = vector.load %arg5[%c256, %c0_32] : memref<320x128xbf16, #tpu.memory_space<vmem>>, vector<32x128xbf16>
    %cst_33 = arith.constant dense<0.000000e+00> : vector<1x128xf32>
    %75 = tpu.matmul %73, %74, %cst_33 {dimension_numbers = #tpu.dot_dimension_numbers<[1], [0], [0], [1], [0, 0, 1, 1], [], []>} : vector<1x32xbf16>, vector<32x128xbf16>, vector<1x128xf32> -> vector<1x128xf32>
    %76 = arith.addf %72, %75 : vector<1x128xf32>
    %c3 = arith.constant 3 : index
    %c0_34 = arith.constant 0 : index
    %77 = vector.load %arg6[%c3, %c0_34] : memref<5x128xf32, #tpu.memory_space<vmem>>, vector<1x128xf32>
    %78 = arith.addf %76, %77 : vector<1x128xf32>
    %79 = vector.extract_strided_slice %78 {offsets = [0, 0], sizes = [1, 64], strides = [1, 1]} : vector<1x128xf32> to vector<1x64xf32>
    %80 = arith.negf %79 : vector<1x64xf32>
    %81 = math.exp %80 : vector<1x64xf32>
    %cst_35 = arith.constant 1.000000e+00 : f32
    %82 = vector.broadcast %cst_35 : f32 to vector<1x64xf32>
    %83 = arith.addf %82, %81 : vector<1x64xf32>
    %84 = arith.divf %82, %83 : vector<1x64xf32>
    %85 = vector.extract_strided_slice %84 {offsets = [0, 0], sizes = [1, 32], strides = [1, 1]} : vector<1x64xf32> to vector<1x32xf32>
    %86 = vector.extract_strided_slice %84 {offsets = [0, 32], sizes = [1, 32], strides = [1, 1]} : vector<1x64xf32> to vector<1x32xf32>
    %87 = vector.extract_strided_slice %78 {offsets = [0, 64], sizes = [1, 32], strides = [1, 1]} : vector<1x128xf32> to vector<1x32xf32>
    %88 = vector.extract_strided_slice %78 {offsets = [0, 96], sizes = [1, 32], strides = [1, 1]} : vector<1x128xf32> to vector<1x32xf32>
    %89 = arith.mulf %85, %88 : vector<1x32xf32>
    %90 = arith.addf %87, %89 : vector<1x32xf32>
    %91 = math.tanh %90 : vector<1x32xf32>
    %cst_36 = arith.constant 1.000000e+00 : f32
    %92 = vector.broadcast %cst_36 : f32 to vector<1x32xf32>
    %93 = arith.subf %92, %86 : vector<1x32xf32>
    %94 = arith.mulf %93, %91 : vector<1x32xf32>
    %95 = arith.mulf %86, %11 : vector<1x32xf32>
    %96 = arith.addf %94, %95 : vector<1x32xf32>
    %97 = arith.truncf %96 : vector<1x32xf32> to vector<1x32xbf16>
    %c288 = arith.constant 288 : index
    %c0_37 = arith.constant 0 : index
    %98 = vector.load %arg5[%c288, %c0_37] : memref<320x128xbf16, #tpu.memory_space<vmem>>, vector<32x128xbf16>
    %cst_38 = arith.constant dense<0.000000e+00> : vector<1x128xf32>
    %99 = tpu.matmul %97, %98, %cst_38 {dimension_numbers = #tpu.dot_dimension_numbers<[1], [0], [0], [1], [0, 0, 1, 1], [], []>} : vector<1x32xbf16>, vector<32x128xbf16>, vector<1x128xf32> -> vector<1x128xf32>
    %c4 = arith.constant 4 : index
    %c0_39 = arith.constant 0 : index
    %100 = vector.load %arg6[%c4, %c0_39] : memref<5x128xf32, #tpu.memory_space<vmem>>, vector<1x128xf32>
    %101 = arith.addf %99, %100 : vector<1x128xf32>
    %cst_40 = arith.constant dense<0xFF800000> : vector<1xf32>
    %102 = vector.multi_reduction <maximumf>, %101, %cst_40 [1] : vector<1x128xf32> to vector<1xf32>
    %103 = vector.shape_cast %102 : vector<1xf32> to vector<1x1xf32>
    %104 = vector.broadcast %103 : vector<1x1xf32> to vector<1x128xf32>
    %105 = arith.subf %101, %104 : vector<1x128xf32>
    %106 = math.exp %105 : vector<1x128xf32>
    %cst_41 = arith.constant dense<0.000000e+00> : vector<1xf32>
    %107 = vector.multi_reduction <add>, %106, %cst_41 [1] : vector<1x128xf32> to vector<1xf32>
    %108 = vector.shape_cast %107 : vector<1xf32> to vector<1x1xf32>
    %109 = math.log %108 : vector<1x1xf32>
    %110 = vector.broadcast %109 : vector<1x1xf32> to vector<1x128xf32>
    %111 = arith.subf %105, %110 : vector<1x128xf32>
    %112 = tpu.concatenate %69, %96 in 0 : vector<1x32xf32>, vector<1x32xf32> -> vector<2x32xf32>
    %c0_42 = arith.constant 0 : index
    %c0_43 = arith.constant 0 : index
    %113 = vector.load %arg8[%c0_42, %c0_43] : memref<2x32xf32, #tpu.memory_space<vmem>>, vector<2x32xf32>
    tpu.vector_store %arg8[%c0_42, %c0_43], %112 {strides = array<i32>} : memref<2x32xf32, #tpu.memory_space<vmem>>, vector<2x32xf32>,
    %cst_44 = arith.constant 0.000000e+00 : f32
    %114 = vector.broadcast %cst_44 : f32 to vector<2x96xf32>
    %115 = tpu.concatenate %112, %114 in 1 : vector<2x32xf32>, vector<2x96xf32> -> vector<2x128xf32>
    %116 = tpu.concatenate %111, %28, %115 in 0 : vector<1x128xf32>, vector<1x128xf32>, vector<2x128xf32> -> vector<4x128xf32>
    %c0_45 = arith.constant 0 : index
    %c0_46 = arith.constant 0 : index
    %c0_47 = arith.constant 0 : index
    %117 = vector.load %arg7[%c0_45, %c0_46, %c0_47] : memref<1x4x128xf32, #tpu.memory_space<vmem>>, vector<1x4x128xf32>
    %118 = vector.shape_cast %117 : vector<1x4x128xf32> to vector<4x128xf32>
    %119 = vector.shape_cast %116 : vector<4x128xf32> to vector<1x4x128xf32>
    tpu.vector_store %arg7[%c0_45, %c0_46, %c0_47], %119 {strides = array<i32>} : memref<1x4x128xf32, #tpu.memory_space<vmem>>, vector<1x4x128xf32>,
    return
  }
  func.func @transform_0(%arg0: i32, %arg1: memref<1xi32, #tpu.memory_space<smem>>) -> (i32, i32, i32) {
    %c0_i32 = arith.constant 0 : i32
    %c0_i32_0 = arith.constant 0 : i32
    %c0_i32_1 = arith.constant 0 : i32
    %c0_i32_2 = arith.constant 0 : i32
    return %c0_i32, %c0_i32_0, %c0_i32_1 : i32, i32, i32
  }
  func.func @transform_1(%arg0: i32, %arg1: memref<1xi32, #tpu.memory_space<smem>>) -> (i32, i32) {
    %c0_i32 = arith.constant 0 : i32
    %c0_i32_0 = arith.constant 0 : i32
    %c0_i32_1 = arith.constant 0 : i32
    return %c0_i32, %c0_i32_0 : i32, i32
  }
  func.func @transform_2(%arg0: i32, %arg1: memref<1xi32, #tpu.memory_space<smem>>) -> (i32, i32) {
    %c0_i32 = arith.constant 0 : i32
    %c0_i32_0 = arith.constant 0 : i32
    %c0_i32_1 = arith.constant 0 : i32
    return %c0_i32, %c0_i32_0 : i32, i32
  }
  func.func @transform_3(%arg0: i32, %arg1: memref<1xi32, #tpu.memory_space<smem>>) -> (i32, i32) {
    %c0_i32 = arith.constant 0 : i32
    %c0_i32_0 = arith.constant 0 : i32
    %c0_i32_1 = arith.constant 0 : i32
    return %c0_i32, %c0_i32_0 : i32, i32
  }
  func.func @transform_4(%arg0: i32, %arg1: memref<1xi32, #tpu.memory_space<smem>>) -> (i32, i32) {
    %c0_i32 = arith.constant 0 : i32
    %c0_i32_0 = arith.constant 0 : i32
    %c0_i32_1 = arith.constant 0 : i32
    return %c0_i32, %c0_i32_0 : i32, i32
  }
  func.func @transform_5(%arg0: i32, %arg1: memref<1xi32, #tpu.memory_space<smem>>) -> (i32, i32, i32) {
    %c0_i32 = arith.constant 0 : i32
    %c0_i32_0 = arith.constant 0 : i32
    %c0_i32_1 = arith.constant 0 : i32
    return %arg0, %c0_i32, %c0_i32_0 : i32, i32, i32
  }
}

</mosaic_0001>

<bundles_post_ra>
// kernel: decoder_rnn_decode.1
= control target key start
LH: loop header
LB: loop body
LE: loop exit
PB: predicated region body
PF: predicated region fallthrough
CT: control target
= control target key end

     0   :  { %12 = vsyncpa [#allocation6], 0  ;;  %s947_s0 = inlined_call_operand.<no memory space> [shape: s32[1], index: 0, kind: input, shape index: {}]   ;;  %s948_s1 = inlined_call_operand.hbm [shape: f32[40,1,128], index: 1, kind: input, shape index: {}]   ;;  %s949_s2 = inlined_call_operand.vmem [shape: f32[2,32], index: 2, kind: input, shape index: {}]   ;;  %s950_s3 = inlined_call_operand.hbm [shape: f32[16,64], index: 3, kind: input, shape index: {}]   ;;  %s951_s4 = inlined_call_operand.hbm [shape: bf16[320,128], index: 4, kind: input, shape index: {}]   ;;  %s952_s5 = inlined_call_operand.hbm [shape: f32[5,128], index: 5, kind: input, shape index: {}]   ;;  %s953_s6 = inlined_call_operand.vmem [shape: f32[1,4,128], index: 6, kind: output, shape index: {}]  }
   0x1   :  { %13 = vsyncpa [#allocation8], 0  ;;  %s34_s23 = sshll.u32 %s950_s3, 4  ;;  %s35_s23 = int_to_ptr.hbm [resolvable:$true] %s34_s23 }
   0x2   :  { %14 = vsyncpa [#allocation11], 0  ;;  %s840_s24 = smov [#allocation7]   ;;  %s19_s28 = sshll.u32 %s948_s1, 4  ;;  %s20_s28 = int_to_ptr.hbm [resolvable:$true] %s19_s28 }
   0x3   :  { %s36_s25 = sshll.u32 %s840_s24, 4  ;;  %s841_s29 = smov 128   ;;  %s37_s25 = int_to_ptr.vmem [resolvable:$true] %s36_s25 }
   0x4   :  { %s842_s30 = smov 8   ;;  %s843_s7 = smov [#allocation5]  }
   0x5   :  { %42 = dma.hbm_to_vmem [thread:$0]  %s35_s23, 256, %s37_s25, [#allocation8], %s841_s29, %s841_s29, %s842_s30  }
   0x6   :  { %s21_s8 = sshll.u32 %s843_s7, 4  ;;  %s844_s9 = smov 16   ;;  %s22_s8 = int_to_ptr.vmem [resolvable:$true] %s21_s8 }
   0x7   :  { %s845_s10 = smov 1   ;;  %s47_s12 = sshll.u32 %s951_s4, 4  ;;  %s48_s12 = int_to_ptr.hbm [resolvable:$true] %s47_s12 }
   0x8   :  { %27 = dma.hbm_to_vmem [thread:$0]  %s20_s28, 640, %s22_s8, [#allocation6], %s844_s9, %s844_s9, %s845_s10  }
   0x9   :  { %s846_s13 = smov [#allocation9]   ;;  %s61_s16 = sshll.u32 %s952_s5, 4  ;;  %s62_s16 = int_to_ptr.hbm [resolvable:$true] %s61_s16 }
   0xa   :  { %s49_s14 = sshll.u32 %s846_s13, 4  ;;  %s847_s17 = smov 64   ;;  %s50_s14 = int_to_ptr.vmem [resolvable:$true] %s49_s14 }
   0xb   :  { %s848_s18 = smov 4   ;;  %s849_s19 = smov [#allocation10]  }
   0xc   :  { %55 = dma.hbm_to_vmem [thread:$0]  %s48_s12, 2560, %s50_s14, [#allocation8], %s847_s17, %s847_s17, %s848_s18  }
   0xd   :  { %s63_s20 = sshll.u32 %s849_s19, 4  ;;  %s64_s20 = int_to_ptr.vmem [resolvable:$true] %s63_s20 }
   0xe   :  { %66 = dma.hbm_to_vmem [thread:$0]  %s62_s16, 128, %s64_s20, [#allocation11]  }
   0xf   :  { %834 = dma.done.wait [#allocation6], 640  }
  0x10   :  { %835 = vsyncadd [#allocation6], 4294966656 }
  0x11   :  { %836 = dma.done.wait [#allocation8], 2816  }
  0x12   :  { %837 = vsyncadd [#allocation8], 4294964480 }
  0x13   :  { %838 = dma.done.wait [#allocation11], 128  }
  0x14   :  { %839 = vsyncadd [#allocation11], 4294967168  ;;  %vm89_vm0 = vcmask 254976   ;;  %v687_v0 = vld [vmem:[#allocation9 + $0x8] sm:$0xff]  ;;  %v689_v1 = vld [vmem:[#allocation9 + $0x18] sm:$0xff]  ;;  %s92_s23 = scalar_lea.vmem [#allocation5], %s947_s0 }
  0x15   :  { %v88_v2 = vld [vmem:[%s949_s2] sm:$0x3]  ;;  %156 = vmatpush.bf16.msra.mxu1 %v687_v0  ;;  %128 = vmatpush.bf16.msra.mxu0 %v689_v1  ;;  %v688_v4 = vld [vmem:[#allocation9 + $0x10] sm:$0xff]  ;;  %vm118_vm1 = vcmask 261120   ;;  %v163_v11 = vld [vmem:[#allocation10] sm:$0x1] }
  0x16   :  { %v686_v3 = vld [vmem:[#allocation9] sm:$0xff]  ;;  %90 = vst.msk [vmem:[#allocation2] sm:$0x3] %vm89_vm0, %v88_v2  ;;  %vm165_vm2 = vcmask 1040384   ;;  %v191_v22 = vld [vmem:[#allocation7 + $0x8] sm:$0xff]  ;;  %v190_v23 = vld [vmem:[#allocation7] sm:$0xff] }
  0x17   :  { %v93_v5 = vld [vmem:[%s92_s23] sm:$0x1]  ;;  %210 = vmatpush.msra.mxu2 %v191_v22  ;;  %v695_v24 = vld [vmem:[#allocation9 + $0x48] sm:$0xff]  ;;  %v693_v28 = vld [vmem:[#allocation9 + $0x38] sm:$0xff]  ;;  %vm192_vm7 = vcmask 130048   ;;  %vm253_vm8 = vcmask 523264  }
  0x18   :  { %v94_v6 = vpack.c.bf16 %v93_v5, %v93_v5  ;;  %v691_v25 = vld [vmem:[#allocation9 + $0x28] sm:$0xff]  ;;  %261 = vmatpush.bf16.msra.mxu3 %v695_v24  ;;  %v694_v26 = vld [vmem:[#allocation9 + $0x40] sm:$0xff]  ;;  %v692_v41 = vld [vmem:[#allocation9 + $0x30] sm:$0xff]  ;;  %s850_s0 = smov 32   ;;  %s851_s2 = smov 96  }
  0x19   :  { %157 = vmatpush.bf16.msra.mxu1 %v686_v3  ;;  %129 = vmatpush.bf16.msra.mxu0 %v688_v4  ;;  %v690_v27 = vld [vmem:[#allocation9 + $0x20] sm:$0xff]  ;;  %v699_v42 = vld [vmem:[#allocation9 + $0x68] sm:$0xff]  ;;  %v697_v43 = vld [vmem:[#allocation9 + $0x58] sm:$0xff] }
  0x1a   :  { %211 = vmatpush.msra.mxu2 %v190_v23  ;;  %v698_v44 = vld [vmem:[#allocation9 + $0x60] sm:$0xff]  ;;  %v696_v49 = vld [vmem:[#allocation9 + $0x50] sm:$0xff] }
  0x1b   :  { %v295_v53 = vld [vmem:[#allocation10 + $0x1] sm:$0x1]  ;;  %v360_v60 = vld [vmem:[#allocation10 + $0x2] sm:$0x1]  ;;  %v700_v23 = vld [vmem:[#allocation9 + $0x70] sm:$0xff] }
  0x1c   :  { %611 = vmatmul.msk.bf16.vlgmr.msra.gmra.mxu1 %vm118_vm1, %v94_v6  ;;  %288 = vmatpush.bf16.msrb.mxu2 %v691_v25 }
  0x1d   :  { %v909_v7 = vld [vmem:[#allocation2] sm:$0x1]  ;;  %262 = vmatpush.bf16.msra.mxu3 %v694_v26  ;;  %325 = vmatpush.bf16.msrb.mxu0 %v699_v42  ;;  %v96_v22 = vld [vmem:[#allocation2 + $0x1] sm:$0x1] }
  0x1e   :  { %v101_v8 = vpack.c.bf16 %v909_v7, %v909_v7  ;;  %353 = vmatpush.bf16.msrb.mxu1 %v697_v43  ;;  %v409_v24 = vpack.c.bf16 %v96_v22, %v96_v22 }
  0x20   :  { %602 = vmatmul.msk.bf16.vlgmr.msra.gmra.mxu0 %vm118_vm1, %v101_v8  ;;  %289 = vmatpush.bf16.msrb.mxu2 %v690_v27 }
  0x21   :  { %263 = vmatpush.bf16.msra.mxu3 %v693_v28  ;;  %326 = vmatpush.bf16.msrb.mxu0 %v698_v44 }
  0x22   :  { %354 = vmatpush.bf16.msrb.mxu1 %v696_v49 }
  0x25   :  { %264 = vmatpush.bf16.msra.mxu3 %v692_v41 }
  0x30   :  { %647 = vmatmul.msk.bf16.vlgmr.msrb.gmra.mxu0 %vm118_vm1, %v101_v8 }
  0x99   :  { %v159_v9 = vpop.f32.mrf.mxu1 }
  0x9d   :  { %v131_v10 = vpop.f32.mrf.mxu0 }
  0x9e   :  { %v160_v12 = vadd.f32 %v159_v9, %v131_v10 }
  0xa0   :  { %v164_v13 = vadd.f32 %v163_v11, %v160_v12 }
  0xa1   :  { %v161_v15 = vpop.f32.mrf.mxu1 }
  0xa2   :  { %v166_v14 = vsel %vm165_vm2, %v164_v13, -inf }
  0xa3   :  { %167 = vmax.xlane.f32.xlu0 %v166_v14 }
  0xa5   :  { %v133_v16 = vpop.f32.mrf.mxu0 }
  0xad   :  { %v328_v50 = vpop.f32.mrf.mxu0 }
  0xb5   :  { %v330_v51 = vpop.f32.mrf.mxu0 }
 0x116   :  { %v168_v17 = vpop.xlane.xlu0 %167 }
 0x117   :  { %v169_v18 = vsub.f32 %v164_v13, %v168_v17 }
 0x119   :  { %v170_v19 = vmul.f32 1.442695, %v169_v18 }
 0x11b   :  { %718 = vpow2.f32 %v170_v19  ;;  %v703_v19 = vld [vmem:[#allocation9 + $0x88] sm:$0xff] }
 0x121   :  { %v719_v20 = vpop.eup %718 }
 0x122   :  { %v172_v21 = vsel %vm165_vm2, %v719_v20, 0.0 }
 0x123   :  { %173 = vadd.xlane.f32.xlu0 %v172_v21  ;;  %v702_v21 = vld [vmem:[#allocation9 + $0x80] sm:$0xff] }
 0x196   :  { %v174_v29 = vpop.xlane.xlu0 %173 }
 0x197   :  { %720 = vrcp.f32 %v174_v29  ;;  %v186_v33 = vand.u32 2147483648, %v174_v29  ;;  %v184_v35 = vand.u32 2147483647, %v174_v29  ;;  %vm180_vm4 = vweird.f32 %v174_v29 }
 0x199   :  { %v187_v37 = vor.u32 1.1754944e-38, %v186_v33  ;;  %vm185_vm6 = vcmp.eq.f32.partialorder %v184_v35, 8.507059e+37  ;;  %v473_v35 = vld [vmem:[#allocation10 + $0x3] sm:$0x1] }
 0x19d   :  { %v721_v30 = vpop.eup %720 }
 0x19e   :  { %v176_v31 = vmul.f32 %v721_v30, %v174_v29  ;;  %vm181_vm3 = vweird.f32 %v721_v30 }
 0x19f   :  { %vm182_vm5 = vmor %vm180_vm4, %vm181_vm3 }
 0x1a0   :  { %v177_v32 = vsub.f32 1.0, %v176_v31 }
 0x1a2   :  { %v178_v34 = vmul.f32 %v721_v30, %v177_v32 }
 0x1a4   :  { %v179_v36 = vadd.f32 %v721_v30, %v178_v34 }
 0x1a6   :  { %v183_v38 = vsel %vm182_vm5, %v721_v30, %v179_v36 }
 0x1a7   :  { %v188_v39 = vsel %vm185_vm6, %v187_v37, %v183_v38 }
 0x1a8   :  { %v916_v40 = vmul.f32 %v719_v20, %v188_v39  ;;  %v701_v20 = vld [vmem:[#allocation9 + $0x78] sm:$0xff] }
 0x1a9   :  { %466 = vmatpush.bf16.msrb.mxu3 %v701_v20 }
 0x1aa   :  { %612 = vmatmul.msk.f32.vlgmr.msra.gmra.mxu2 %vm192_vm7, %v916_v40 }
 0x1ab   :  { %435 = vmatpush.bf16.msra.mxu2 %v703_v19 }
 0x1ad   :  { %467 = vmatpush.bf16.msrb.mxu3 %v700_v23 }
 0x1af   :  { %436 = vmatpush.bf16.msra.mxu2 %v702_v21 }
 0x1b2   :  { %638 = vmatmul.msk.bf16.vlgmr.msrb.gmra.mxu2 %vm118_vm1, %v94_v6 }
 0x1c2   :  { %666 = vmatmul.msk.bf16.vlgmr.msra.gmra.mxu2 %vm118_vm1, %v409_v24 }
 0x22d   :  { %v213_v45 = vpop.f32.mrf.mxu2 }
 0x22e   :  { %v220_v46 = vpack.c.bf16 %v213_v45, %v213_v45 }
 0x230   :  { %629 = vmatmul.msk.bf16.vlgmr.msra.gmra.mxu3 %vm253_vm8, %v220_v46 }
 0x235   :  { %v291_v47 = vpop.f32.mrf.mxu2 }
 0x23d   :  { %v293_v48 = vpop.f32.mrf.mxu2 }
 0x2b3   :  { %v266_v52 = vpop.f32.mrf.mxu3 }
 0x2b4   :  { %v292_v54 = vadd.f32 %v291_v47, %v266_v52 }
 0x2b6   :  { %v296_v55 = vadd.f32 %v295_v53, %v292_v54 }
 0x2b8   :  { %v297_v56 = vmax.f32 %v296_v55, 0.0 }
 0x2ba   :  { %v298_v57 = vpack.c.bf16 %v297_v56, %v297_v56 }
 0x2bb   :  { %v268_v58 = vpop.f32.mrf.mxu3 }
 0x2bc   :  { %656 = vmatmul.msk.bf16.vlgmr.msrb.gmra.mxu1 %vm118_vm1, %v298_v57  ;;  %v705_v58 = vld [vmem:[#allocation9 + $0x98] sm:$0xff] }
 0x2bd   :  { %547 = vmatpush.bf16.msra.mxu0 %v705_v58 }
 0x339   :  { %v356_v59 = vpop.f32.mrf.mxu1 }
 0x33a   :  { %v357_v61 = vadd.f32 %v356_v59, %v328_v50  ;;  %v704_v59 = vld [vmem:[#allocation9 + $0x90] sm:$0xff] }
 0x33b   :  { %548 = vmatpush.bf16.msra.mxu0 %v704_v59 }
 0x33c   :  { %v361_v62 = vadd.f32 %v360_v60, %v357_v61 }
 0x33e   :  { %382 = vrot.lane.b32.xlu1 %v361_v62, %s850_s0  ;;  %v657_v0 = vmul.f32 -1.442695, %v361_v62 }
 0x340   :  { %722 = vpow2.f32 %v657_v0 }
 0x341   :  { %v358_v63 = vpop.f32.mrf.mxu1 }
 0x346   :  { %v723_v1 = vpop.eup %722 }
 0x347   :  { %v365_v2 = vadd.f32 1.0, %v723_v1 }
 0x349   :  { %724 = vrcp.f32 %v365_v2  ;;  %v377_v9 = vand.u32 2147483648, %v365_v2  ;;  %vm371_vm10 = vweird.f32 %v365_v2  ;;  %v375_v10 = vand.u32 2147483647, %v365_v2 }
 0x34b   :  { %v378_v12 = vor.u32 1.1754944e-38, %v377_v9  ;;  %vm376_vm12 = vcmp.eq.f32.partialorder %v375_v10, 8.507059e+37 }
 0x34f   :  { %v725_v3 = vpop.eup %724 }
 0x350   :  { %v367_v4 = vmul.f32 %v725_v3, %v365_v2  ;;  %vm372_vm9 = vweird.f32 %v725_v3 }
 0x351   :  { %vm373_vm11 = vmor %vm371_vm10, %vm372_vm9 }
 0x352   :  { %v368_v5 = vsub.f32 1.0, %v367_v4 }
 0x354   :  { %v369_v6 = vmul.f32 %v725_v3, %v368_v5 }
 0x356   :  { %v370_v8 = vadd.f32 %v725_v3, %v369_v6 }
 0x358   :  { %v374_v11 = vsel %vm373_vm11, %v725_v3, %v370_v8  ;;  %v522_v8 = vld [vmem:[#allocation10 + $0x4] sm:$0x1] }
 0x359   :  { %v379_v14 = vsel %vm376_vm12, %v378_v12, %v374_v11 }
 0x35a   :  { %v392_v26 = vsub.f32 1.0, %v379_v14 }
 0x3b0   :  { %v383_v13 = vpop.permute.xlu1 %382 }
 0x3b1   :  { %v385_v15 = vmul.f32 %v383_v13, %v379_v14 }
 0x3b3   :  { %387 = vrot.lane.b32.xlu1 %v385_v15, %s847_s17 }
 0x425   :  { %v388_v16 = vpop.permute.xlu1 %387 }
 0x426   :  { %v390_v17 = vadd.f32 %v388_v16, %v361_v62 }
 0x428   :  { %726 = vtanh.f32 %v390_v17 }
 0x42e   :  { %v727_v18 = vpop.eup %726 }
 0x42f   :  { %394 = vrot.lane.b32.xlu2 %v727_v18, %s851_s2 }
 0x437   :  { %399 = vrot.lane.b32.xlu2 %v909_v7, %s850_s0  ;;  %v438_v7 = vpop.f32.mrf.mxu2 }
 0x43f   :  { %v440_v33 = vpop.f32.mrf.mxu2 }
 0x489   :  { %v395_v25 = vpop.permute.xlu2 %394 }
 0x48a   :  { %v397_v28 = vmul.f32 %v395_v25, %v392_v26 }
 0x491   :  { %v400_v27 = vpop.permute.xlu2 %399 }
 0x492   :  { %v402_v29 = vmul.f32 %v400_v27, %v379_v14 }
 0x494   :  { %v403_v30 = vadd.f32 %v402_v29, %v397_v28 }
 0x496   :  { %v404_v31 = vpack.c.bf16 %v403_v30, %v403_v30 }
 0x498   :  { %443 = vrot.lane.b32.xlu0 %v404_v31, %s851_s2 }
 0x50a   :  { %v444_v32 = vpop.permute.xlu0 %443 }
 0x50b   :  { %675 = vmatmul.msk.bf16.vlgmr.msrb.gmra.mxu3 %vm118_vm1, %v444_v32 }
 0x58e   :  { %v469_v34 = vpop.f32.mrf.mxu3 }
 0x58f   :  { %v470_v36 = vadd.f32 %v469_v34, %v438_v7 }
 0x591   :  { %v474_v37 = vadd.f32 %v473_v35, %v470_v36 }
 0x593   :  { %495 = vrot.lane.b32.xlu1 %v474_v37, %s850_s0  ;;  %v676_v39 = vmul.f32 -1.442695, %v474_v37 }
 0x595   :  { %728 = vpow2.f32 %v676_v39 }
 0x596   :  { %v471_v38 = vpop.f32.mrf.mxu3 }
 0x59b   :  { %v729_v41 = vpop.eup %728 }
 0x59c   :  { %v478_v42 = vadd.f32 1.0, %v729_v41 }
 0x59e   :  { %730 = vrcp.f32 %v478_v42  ;;  %v490_v48 = vand.u32 2147483648, %v478_v42  ;;  %vm484_vm14 = vweird.f32 %v478_v42  ;;  %v488_v49 = vand.u32 2147483647, %v478_v42 }
 0x5a0   :  { %v491_v51 = vor.u32 1.1754944e-38, %v490_v48  ;;  %vm489_vm3 = vcmp.eq.f32.partialorder %v488_v49, 8.507059e+37 }
 0x5a4   :  { %v731_v43 = vpop.eup %730 }
 0x5a5   :  { %v480_v44 = vmul.f32 %v731_v43, %v478_v42  ;;  %vm485_vm13 = vweird.f32 %v731_v43 }
 0x5a6   :  { %vm486_vm15 = vmor %vm484_vm14, %vm485_vm13 }
 0x5a7   :  { %v481_v45 = vsub.f32 1.0, %v480_v44 }
 0x5a9   :  { %v482_v46 = vmul.f32 %v731_v43, %v481_v45 }
 0x5ab   :  { %v483_v47 = vadd.f32 %v731_v43, %v482_v46 }
 0x5ad   :  { %v487_v50 = vsel %vm486_vm15, %v731_v43, %v483_v47 }
 0x5ae   :  { %v492_v53 = vsel %vm489_vm3, %v491_v51, %v487_v50 }
 0x5af   :  { %v505_v61 = vsub.f32 1.0, %v492_v53 }
 0x605   :  { %v496_v52 = vpop.permute.xlu1 %495 }
 0x606   :  { %v498_v54 = vmul.f32 %v496_v52, %v492_v53 }
 0x608   :  { %500 = vrot.lane.b32.xlu2 %v498_v54, %s847_s17 }
 0x610   :  { %512 = vrot.lane.b32.xlu2 %v96_v22, %s850_s0  ;;  %v577_v22 = vrot.slane %v916_v40, 7 }
 0x662   :  { %v501_v55 = vpop.permute.xlu2 %500 }
 0x663   :  { %v503_v56 = vadd.f32 %v501_v55, %v474_v37 }
 0x665   :  { %732 = vtanh.f32 %v503_v56 }
 0x66a   :  { %v513_v60 = vpop.permute.xlu2 %512 }
 0x66b   :  { %v733_v57 = vpop.eup %732  ;;  %v515_v63 = vmul.f32 %v513_v60, %v492_v53 }
 0x66c   :  { %507 = vrot.lane.b32.xlu1 %v733_v57, %s851_s2 }
 0x6de   :  { %v508_v62 = vpop.permute.xlu1 %507 }
 0x6df   :  { %v510_v0 = vmul.f32 %v508_v62, %v505_v61 }
 0x6e1   :  { %v516_v1 = vadd.f32 %v515_v63, %v510_v0 }
 0x6e3   :  { %v517_v2 = vpack.c.bf16 %v516_v1, %v516_v1  ;;  %v567_v3 = vrot.slane %v516_v1, 7 }
 0x6e5   :  { %524 = vrot.lane.b32.xlu1 %v517_v2, %s851_s2  ;;  %v569_v4 = vsel %vm165_vm2, %v403_v30, %v567_v3 }
 0x6ed   :  { %571 = vrot.lane.b32.xlu1 %v569_v4, %s851_s2 }
 0x757   :  { %v525_v5 = vpop.permute.xlu1 %524 }
 0x758   :  { %685 = vmatmul.msk.bf16.vlgmr.msra.gmra.mxu0 %vm118_vm1, %v525_v5 }
 0x75f   :  { %v572_v6 = vpop.permute.xlu1 %571 }
 0x760   :  { %575 = vst.msk [vmem:[#allocation2] sm:$0x3] %vm89_vm0, %v572_v6  ;;  %v576_v20 = vsel %vm118_vm1, %v572_v6, 0.0  ;;  %vm583_vm0 = vcmask 1041408  }
 0x761   :  { %v580_v24 = vrot.slane %v576_v20, 6 }
 0x7d5   :  { %v550_v9 = vpop.f32.mrf.mxu0 }
 0x7d6   :  { %v551_v10 = vadd.f32 %v550_v9, %v522_v8 }
 0x7d8   :  { %v554_v11 = vsel %vm165_vm2, %v551_v10, -inf }
 0x7d9   :  { %555 = vmax.xlane.f32.xlu2 %v554_v11 }
 0x7dd   :  { %v552_v12 = vpop.f32.mrf.mxu0 }
 0x84c   :  { %v556_v13 = vpop.xlane.xlu2 %555 }
 0x84d   :  { %v557_v14 = vsub.f32 %v551_v10, %v556_v13 }
 0x84f   :  { %v558_v15 = vmul.f32 1.442695, %v557_v14 }
 0x851   :  { %734 = vpow2.f32 %v558_v15 }
 0x857   :  { %v735_v16 = vpop.eup %734 }
 0x858   :  { %v560_v17 = vsel %vm165_vm2, %v735_v16, 0.0 }
 0x859   :  { %561 = vadd.xlane.f32.xlu0 %v560_v17 }
 0x8cc   :  { %v562_v18 = vpop.xlane.xlu0 %561 }
 0x8cd   :  { %736 = vlog2.f32 %v562_v18 }
 0x8d3   :  { %v737_v19 = vpop.eup %736 }
 0x8d4   :  { %v564_v21 = vmul.f32 0.6931472, %v737_v19 }
 0x8d6   :  { %v565_v23 = vsub.f32 %v557_v14, %v564_v21 }
 0x8d8   :  { %v582_v25 = vsel %vm165_vm2, %v565_v23, %v577_v22 }
 0x8d9   :  { %v584_v26 = vsel %vm583_vm0, %v582_v25, %v580_v24 }
 0x8da   :  { %585 = vst [vmem:[%s953_s6] sm:$0xf] %v584_v26 }
 0x8db   :  { %590 = vsyncpa [#allocation6], 1 }
 0x8dc   :  { %591 = vsyncpa [#allocation8], 1 }
 0x8dd   :  { %592 = vsyncpa [#allocation11], 1 }

</bundles_post_ra>
